<compile_context>
chip_gen: v7x
topology: tpu7x:2x2x1
jax: 0.10.0
libtpu: 0.0.40
codegen_flags: <defaults>
</compile_context>

<pallas_src>
import jax
import jax.numpy as jnp
from jax.experimental import pallas as pl
from jax.experimental.pallas import tpu as pltpu

K_IN = 28 * 28    # 784 (divisible by 8; equals full last dim of x_flat)
H1 = 256
H2 = 64
N_OUT = 10
TB_MAX = 1024     # batch-tile upper bound; safe under v5e's 16 MiB scoped VMEM


def _mlp_kernel(x_ref, w1_ref, b1_ref, w2_ref, b2_ref, w3_ref, b3_ref, o_ref):
    # x_ref:  (tb, 784)  f32  (cast to bf16 in-kernel; VPU has slack under DMA)
    # w1_ref: (784, 256) bf16   b1_ref: (1, 256) f32
    # w2_ref: (256, 64)  f32    b2_ref: (1, 64)  f32
    # w3_ref: (64, 10)   f32    b3_ref: (1, 10)  f32
    # o_ref:  (tb, 10)   f32
    x = x_ref[...].astype(jnp.bfloat16)

    h1 = jnp.dot(x, w1_ref[...], preferred_element_type=jnp.float32) + b1_ref[...]
    h1 = jnp.maximum(h1, 0.0)                      # stays f32 (parity w/ PyTorch)

    h2 = jnp.dot(h1, w2_ref[...], preferred_element_type=jnp.float32) + b2_ref[...]
    h2 = jnp.maximum(h2, 0.0)                      # stays f32

    o_ref[...] = jnp.dot(h2, w3_ref[...], preferred_element_type=jnp.float32) + b3_ref[...]


def _round_up(a, m):
    return (a + m - 1) // m * m


def image_classifier_forward(x, params, tb_max=TB_MAX):
    """x: (B, 1, 28, 28) float32 (NCHW, like PyTorch). Returns logits (B, 10)."""
    w1, b1, w2, b2, w3, b3 = params
    B = x.shape[0]
    x_flat = x.reshape(B, K_IN)                    # nn.Flatten(): contiguous, free

    # Adaptive batch tile: latency-proportional for small B, amortizes the
    # ~0.35us/grid-step overhead for large B. Multiple of 16 (bf16 sublanes).
    tb = min(tb_max, _round_up(B, 16))
    B_pad = _round_up(B, tb)
    if B_pad != B:
        x_flat = jnp.pad(x_flat, ((0, B_pad - B), (0, 0)))

    # Layer 1 weight in bf16 (MXU operand, halves its DMA/residency);
    # layers 2-3 are tiny -> keep f32 for tighter parity with the f32 reference.
    w1_p = w1.astype(jnp.bfloat16)                 # (784, 256)
    b1_p = b1.astype(jnp.float32)                  # (1, 256)
    w2_p = w2.astype(jnp.float32)                  # (256, 64)
    b2_p = b2.astype(jnp.float32)                  # (1, 64)
    w3_p = w3.astype(jnp.float32)                  # (64, 10)
    b3_p = b3.astype(jnp.float32)                  # (1, 10)

    grid = (B_pad // tb,)

    weight_bytes = (w1_p.size * 2
                    + (w2_p.size + w3_p.size + b1_p.size + b2_p.size + b3_p.size) * 4)
    cost = pl.CostEstimate(
        flops=2 * B_pad * (K_IN * H1 + H1 * H2 + H2 * N_OUT),
        transcendentals=0,
        bytes_accessed=B_pad * K_IN * 4 + weight_bytes + B_pad * N_OUT * 4,
    )

    out = pl.pallas_call(
        _mlp_kernel,
        out_shape=jax.ShapeDtypeStruct((B_pad, N_OUT), jnp.float32),
        grid_spec=pltpu.PrefetchScalarGridSpec(
            num_scalar_prefetch=0,
            grid=grid,
            in_specs=[
                pl.BlockSpec((tb, K_IN), lambda i: (i, 0)),     # x tile (streams)
                pl.BlockSpec((K_IN, H1), lambda i: (0, 0)),     # w1 (resident)
                pl.BlockSpec((1, H1), lambda i: (0, 0)),        # b1
                pl.BlockSpec((H1, H2), lambda i: (0, 0)),       # w2
                pl.BlockSpec((1, H2), lambda i: (0, 0)),        # b2
                pl.BlockSpec((H2, N_OUT), lambda i: (0, 0)),    # w3
                pl.BlockSpec((1, N_OUT), lambda i: (0, 0)),     # b3
            ],
            out_specs=pl.BlockSpec((tb, N_OUT), lambda i: (i, 0)),
        ),
        compiler_params=pltpu.CompilerParams(
            # Batch axis independent -> megacore / v7x dual-TC sharding.
            # (If an xprof trace on v7x shows one TC idle, switch to
            #  pltpu.CORE_PARALLEL behind a generation check.)
            dimension_semantics=("parallel",),
        ),
        cost_estimate=cost,
    )(x_flat, w1_p, b1_p, w2_p, b2_p, w3_p, b3_p)

    return out[:B] if B_pad != B else out


def init_params(key):
    """Deterministic params matching PyTorch Linear shapes (stored as (in, out))."""
    k1, k2, k3, k4, k5, k6 = jax.random.split(key, 6)

    def linear(kw, kb, fan_in, fan_out):
        bound = 1.0 / jnp.sqrt(fan_in)
        w = jax.random.uniform(kw, (fan_in, fan_out), jnp.float32, -bound, bound)
        b = jax.random.uniform(kb, (1, fan_out), jnp.float32, -bound, bound)
        return w, b

    w1, b1 = linear(k1, k2, K_IN, H1)
    w2, b2 = linear(k3, k4, H1, H2)
    w3, b3 = linear(k5, k6, H2, N_OUT)
    return (w1, b1, w2, b2, w3, b3)


def _reference_forward_tight(x, params):
    """Mimics the kernel's arithmetic: bf16 x/w1 operands, everything else f32."""
    w1, b1, w2, b2, w3, b3 = params
    xb = x.reshape(x.shape[0], -1).astype(jnp.bfloat16)
    w1b = w1.astype(jnp.bfloat16)
    h1 = jnp.maximum(jnp.dot(xb, w1b, preferred_element_type=jnp.float32) + b1, 0.0)
    h2 = jnp.maximum(jnp.dot(h1, w2, preferred_element_type=jnp.float32) + b2, 0.0)
    return jnp.dot(h2, w3, preferred_element_type=jnp.float32) + b3


def _reference_forward_f32(x, params):
    """Pure f32 PyTorch-equivalent math."""
    w1, b1, w2, b2, w3, b3 = params
    xf = x.reshape(x.shape[0], -1)
    h1 = jnp.maximum(xf @ w1 + b1, 0.0)
    h2 = jnp.maximum(h1 @ w2 + b2, 0.0)
    return h2 @ w3 + b3


if __name__ == "__main__":
    key = jax.random.PRNGKey(0)
    kx, kp = jax.random.split(key)

    B = 8
    x = jax.random.normal(kx, (B, 1, 28, 28), dtype=jnp.float32)  # NCHW input
    params = init_params(kp)

    logits = jax.block_until_ready(image_classifier_forward(x, params))
    assert logits.shape == (B, N_OUT)

    # Tight check vs. a reference with identical arithmetic (bf16 x/w1, f32 rest).
    ref_tight = _reference_forward_tight(x, params)
    assert jnp.allclose(logits, ref_tight, atol=1e-2, rtol=1e-2)

    # Looser check vs. the pure-f32 PyTorch-equivalent math (bf16 rounding of x/w1 only).
    ref_f32 = _reference_forward_f32(x, params)
    assert jnp.allclose(logits, ref_f32, atol=1e-1, rtol=1e-1)

    print("KERNEL_OK")
</pallas_src>

<mosaic_0001>
module attributes {stable_mosaic.version = 11 : i64} {
  func.func @_mlp_kernel(%arg0: i32, %arg1: memref<16x784xf32, #tpu.memory_space<vmem>>, %arg2: memref<784x256xbf16, #tpu.memory_space<vmem>>, %arg3: memref<1x256xf32, #tpu.memory_space<vmem>>, %arg4: memref<256x64xf32, #tpu.memory_space<vmem>>, %arg5: memref<1x64xf32, #tpu.memory_space<vmem>>, %arg6: memref<64x10xf32, #tpu.memory_space<vmem>>, %arg7: memref<1x10xf32, #tpu.memory_space<vmem>>, %arg8: memref<16x10xf32, #tpu.memory_space<vmem>>) attributes {dimension_semantics = [#tpu.dimension_semantics<parallel>], iteration_bounds = array<i64: 1>, scalar_prefetch = 0 : i64, scratch_operands = 0 : i64, tpu.core_type = #tpu.core_type<tc>, window_params = [{transform_indices = @transform_0, window_bounds = array<i64: 16, 784>}, {pipeline_mode = #tpu.pipeline_mode<synchronous>, transform_indices = @transform_1, window_bounds = array<i64: 784, 256>}, {pipeline_mode = #tpu.pipeline_mode<synchronous>, transform_indices = @transform_2, window_bounds = array<i64: 1, 256>}, {pipeline_mode = #tpu.pipeline_mode<synchronous>, transform_indices = @transform_3, window_bounds = array<i64: 256, 64>}, {pipeline_mode = #tpu.pipeline_mode<synchronous>, transform_indices = @transform_4, window_bounds = array<i64: 1, 64>}, {pipeline_mode = #tpu.pipeline_mode<synchronous>, transform_indices = @transform_5, window_bounds = array<i64: 64, 10>}, {pipeline_mode = #tpu.pipeline_mode<synchronous>, transform_indices = @transform_6, window_bounds = array<i64: 1, 10>}, {transform_indices = @transform_7, window_bounds = array<i64: 16, 10>}]} {
    %c0 = arith.constant 0 : index
    %c0_0 = arith.constant 0 : index
    %0 = vector.load %arg1[%c0, %c0_0] : memref<16x784xf32, #tpu.memory_space<vmem>>, vector<16x784xf32>
    %1 = arith.truncf %0 : vector<16x784xf32> to vector<16x784xbf16>
    %c0_1 = arith.constant 0 : index
    %c0_2 = arith.constant 0 : index
    %2 = vector.load %arg2[%c0_1, %c0_2] : memref<784x256xbf16, #tpu.memory_space<vmem>>, vector<784x256xbf16>
    %cst = arith.constant dense<0.000000e+00> : vector<16x256xf32>
    %3 = tpu.matmul %1, %2, %cst {dimension_numbers = #tpu.dot_dimension_numbers<[1], [0], [0], [1], [0, 0, 1, 1], [], []>} : vector<16x784xbf16>, vector<784x256xbf16>, vector<16x256xf32> -> vector<16x256xf32>
    %c0_3 = arith.constant 0 : index
    %c0_4 = arith.constant 0 : index
    %4 = vector.load %arg3[%c0_3, %c0_4] : memref<1x256xf32, #tpu.memory_space<vmem>>, vector<1x256xf32>
    %5 = vector.broadcast %4 : vector<1x256xf32> to vector<16x256xf32>
    %6 = arith.addf %3, %5 : vector<16x256xf32>
    %cst_5 = arith.constant 0.000000e+00 : f32
    %7 = vector.broadcast %cst_5 : f32 to vector<16x256xf32>
    %8 = arith.maximumf %6, %7 : vector<16x256xf32>
    %c0_6 = arith.constant 0 : index
    %c0_7 = arith.constant 0 : index
    %9 = vector.load %arg4[%c0_6, %c0_7] : memref<256x64xf32, #tpu.memory_space<vmem>>, vector<256x64xf32>
    %cst_8 = arith.constant dense<0.000000e+00> : vector<16x64xf32>
    %10 = tpu.matmul %8, %9, %cst_8 {dimension_numbers = #tpu.dot_dimension_numbers<[1], [0], [0], [1], [0, 0, 1, 1], [], []>} : vector<16x256xf32>, vector<256x64xf32>, vector<16x64xf32> -> vector<16x64xf32>
    %c0_9 = arith.constant 0 : index
    %c0_10 = arith.constant 0 : index
    %11 = vector.load %arg5[%c0_9, %c0_10] : memref<1x64xf32, #tpu.memory_space<vmem>>, vector<1x64xf32>
    %12 = vector.broadcast %11 : vector<1x64xf32> to vector<16x64xf32>
    %13 = arith.addf %10, %12 : vector<16x64xf32>
    %cst_11 = arith.constant 0.000000e+00 : f32
    %14 = vector.broadcast %cst_11 : f32 to vector<16x64xf32>
    %15 = arith.maximumf %13, %14 : vector<16x64xf32>
    %c0_12 = arith.constant 0 : index
    %c0_13 = arith.constant 0 : index
    %16 = vector.load %arg6[%c0_12, %c0_13] : memref<64x10xf32, #tpu.memory_space<vmem>>, vector<64x10xf32>
    %cst_14 = arith.constant dense<0.000000e+00> : vector<16x10xf32>
    %17 = tpu.matmul %15, %16, %cst_14 {dimension_numbers = #tpu.dot_dimension_numbers<[1], [0], [0], [1], [0, 0, 1, 1], [], []>} : vector<16x64xf32>, vector<64x10xf32>, vector<16x10xf32> -> vector<16x10xf32>
    %c0_15 = arith.constant 0 : index
    %c0_16 = arith.constant 0 : index
    %18 = vector.load %arg7[%c0_15, %c0_16] : memref<1x10xf32, #tpu.memory_space<vmem>>, vector<1x10xf32>
    %19 = vector.broadcast %18 : vector<1x10xf32> to vector<16x10xf32>
    %20 = arith.addf %17, %19 : vector<16x10xf32>
    %c0_17 = arith.constant 0 : index
    %c0_18 = arith.constant 0 : index
    %21 = vector.load %arg8[%c0_17, %c0_18] : memref<16x10xf32, #tpu.memory_space<vmem>>, vector<16x10xf32>
    tpu.vector_store %arg8[%c0_17, %c0_18], %20 {strides = array<i32>} : memref<16x10xf32, #tpu.memory_space<vmem>>, vector<16x10xf32>,
    return
  }
  func.func @transform_0(%arg0: i32) -> (i32, i32) {
    %c0_i32 = arith.constant 0 : i32
    %c0_i32_0 = arith.constant 0 : i32
    return %arg0, %c0_i32 : i32, i32
  }
  func.func @transform_1(%arg0: i32) -> (i32, i32) {
    %c0_i32 = arith.constant 0 : i32
    %c0_i32_0 = arith.constant 0 : i32
    %c0_i32_1 = arith.constant 0 : i32
    return %c0_i32, %c0_i32_0 : i32, i32
  }
  func.func @transform_2(%arg0: i32) -> (i32, i32) {
    %c0_i32 = arith.constant 0 : i32
    %c0_i32_0 = arith.constant 0 : i32
    %c0_i32_1 = arith.constant 0 : i32
    return %c0_i32, %c0_i32_0 : i32, i32
  }
  func.func @transform_3(%arg0: i32) -> (i32, i32) {
    %c0_i32 = arith.constant 0 : i32
    %c0_i32_0 = arith.constant 0 : i32
    %c0_i32_1 = arith.constant 0 : i32
    return %c0_i32, %c0_i32_0 : i32, i32
  }
  func.func @transform_4(%arg0: i32) -> (i32, i32) {
    %c0_i32 = arith.constant 0 : i32
    %c0_i32_0 = arith.constant 0 : i32
    %c0_i32_1 = arith.constant 0 : i32
    return %c0_i32, %c0_i32_0 : i32, i32
  }
  func.func @transform_5(%arg0: i32) -> (i32, i32) {
    %c0_i32 = arith.constant 0 : i32
    %c0_i32_0 = arith.constant 0 : i32
    %c0_i32_1 = arith.constant 0 : i32
    return %c0_i32, %c0_i32_0 : i32, i32
  }
  func.func @transform_6(%arg0: i32) -> (i32, i32) {
    %c0_i32 = arith.constant 0 : i32
    %c0_i32_0 = arith.constant 0 : i32
    %c0_i32_1 = arith.constant 0 : i32
    return %c0_i32, %c0_i32_0 : i32, i32
  }
  func.func @transform_7(%arg0: i32) -> (i32, i32) {
    %c0_i32 = arith.constant 0 : i32
    %c0_i32_0 = arith.constant 0 : i32
    return %arg0, %c0_i32 : i32, i32
  }
}

</mosaic_0001>

<bundles_post_ra>
// kernel: tpu_custom_call.1
= control target key start
LH: loop header
LB: loop body
LE: loop exit
PB: predicated region body
PF: predicated region fallthrough
CT: control target
= control target key end

     0   :  { %12 = vsyncpa [#allocation3], 0  ;;  %s1756_s0 = inlined_call_operand.vmem [shape: f32[16,784], index: 0, kind: input, shape index: {}]   ;;  %s1757_s1 = inlined_call_operand.hbm [shape: bf16[784,256], index: 1, kind: input, shape index: {}]   ;;  %s1758_s2 = inlined_call_operand.vmem [shape: f32[1,256], index: 2, kind: input, shape index: {}]   ;;  %s1759_s3 = inlined_call_operand.vmem [shape: f32[256,64], index: 3, kind: input, shape index: {}]   ;;  %s1760_s4 = inlined_call_operand.vmem [shape: f32[1,64], index: 4, kind: input, shape index: {}]   ;;  %s1761_s5 = inlined_call_operand.vmem [shape: f32[64,10], index: 5, kind: input, shape index: {}]   ;;  %s1762_s6 = inlined_call_operand.vmem [shape: f32[1,10], index: 6, kind: input, shape index: {}]   ;;  %s1763_s7 = inlined_call_operand.hbm [shape: f32[16,10], index: 7, kind: output, shape index: {}]  }
   0x1   :  { %13 = vsyncpa [#allocation4], 0  ;;  %s1510_s24 = smov [#allocation2]   ;;  %s1462_s28 = scalar_lea.hbm %s1757_s1, 12544 }
   0x2   :  { %s21_s25 = sshll.u32 %s1510_s24, 4  ;;  %p1463_p0 = scmp.ne.s32.totalorder %s1757_s1, %s1462_s28  ;;  %s22_s25 = int_to_ptr.vmem [resolvable:$true] %s21_s25 }
   0x3   :  { %p1466_p1 = scmp.lt.u32.totalorder %s1462_s28, %s1757_s1 }
   0x5   :  { %p1468_p2 = pnand %p1466_p1, %p1463_p0 }
   0x7   :  { %1471 = shalt.err (!%p1468_p2)
}
   0x8   :  { %s1472_s10 = scalar_lea.vmem %s22_s25, 12544  ;;  %p1477_p4 = scmp.lt.s32.totalorder %s22_s25, %s22_s25 }
   0x9   :  { %p1473_p3 = scmp.ne.s32.totalorder %s22_s25, %s1472_s10  ;;  %p1478_p5 = scmp.lt.s32.totalorder %s1472_s10, %s1472_s10 }
   0xb   :  { %p1479_p6 = por %p1478_p5, %p1477_p4 }
   0xd   :  { %p1480_p7 = pnand %p1479_p6, %p1473_p3 }
   0xf   :  { %1483 = shalt.err (!%p1480_p7)
}
  0x10   :  { %s1511_s11 = smov 128   ;;  %s1512_s12 = smov 8  }
  0x11   :  { %27 = dma.hbm_to_vmem [thread:$0]  %s1757_s1, 12544, %s22_s25, [#allocation3], %s1511_s11, %s1511_s11, %s1512_s12  }
  0x12   :  { %1506 = dma.done.wait [#allocation3], 12544  }
  0x13   :  { %1507 = vsyncadd [#allocation3], 4294954752  ;;  %v1315_v0 = vld [vmem:[#allocation2 + $0x104] ss:$8 sps:$4 sm:$0xff]   ;;  %v1317_v1 = vld [vmem:[#allocation2 + $0x100] ss:$8 sps:$4 sm:$0xff]  }
  0x14   :  { %710 = vmatprep.subr.bf16.mxu0 %v1315_v0  ;;  %v1318_v2 = vld [vmem:[#allocation2 + $0x114] ss:$8 sps:$4 sm:$0xff]   ;;  %v1320_v3 = vld [vmem:[#allocation2 + $0x110] ss:$8 sps:$4 sm:$0xff]   ;;  %v1321_v4 = vld [vmem:[#allocation2 + $0x124] ss:$8 sps:$4 sm:$0xff]  }
  0x15   :  { %711 = vmatpush1.bf16.msra.mxu0 %v1317_v1  ;;  %v1323_v5 = vld [vmem:[#allocation2 + $0x120] ss:$8 sps:$4 sm:$0xff]   ;;  %v1324_v6 = vld [vmem:[#allocation2 + $0x134] ss:$8 sps:$4 sm:$0xff]   ;;  %v1326_v7 = vld [vmem:[#allocation2 + $0x130] ss:$8 sps:$4 sm:$0xff]  }
  0x16   :  { %712 = vmatprep.subr.bf16.mxu0 %v1318_v2  ;;  %v1327_v8 = vld [vmem:[#allocation2 + $0x144] ss:$8 sps:$4 sm:$0xff]   ;;  %v1329_v9 = vld [vmem:[#allocation2 + $0x140] ss:$8 sps:$4 sm:$0xff]   ;;  %v1330_v10 = vld [vmem:[#allocation2 + $0x154] ss:$8 sps:$4 sm:$0xff]  }
  0x17   :  { %v1332_v11 = vld [vmem:[#allocation2 + $0x150] ss:$8 sps:$4 sm:$0xff]   ;;  %v1357_v12 = vld [vmem:[#allocation2 + $0x4] ss:$8 sps:$4 sm:$0xff]   ;;  %v1359_v13 = vld [vmem:[#allocation2] ss:$8 sps:$4 sm:$0xff]  }
  0x18   :  { %v1333_v14 = vld [vmem:[#allocation2 + $0x164] ss:$8 sps:$4 sm:$0xff]   ;;  %667 = vmatprep.subr.bf16.mxu1 %v1357_v12  ;;  %v1363_v15 = vld [vmem:[#allocation2 + $0x14] ss:$8 sps:$4 sm:$0xff]   ;;  %v1365_v16 = vld [vmem:[#allocation2 + $0x10] ss:$8 sps:$4 sm:$0xff]  }
  0x19   :  { %713 = vmatpush1.bf16.msra.mxu0 %v1320_v3  ;;  %668 = vmatpush1.bf16.msra.mxu1 %v1359_v13  ;;  %v1335_v17 = vld [vmem:[#allocation2 + $0x160] ss:$8 sps:$4 sm:$0xff]   ;;  %v1336_v18 = vld [vmem:[#allocation2 + $0x174] ss:$8 sps:$4 sm:$0xff]   ;;  %v1369_v19 = vld [vmem:[#allocation2 + $0x24] ss:$8 sps:$4 sm:$0xff]  }
  0x1a   :  { %714 = vmatprep.subr.bf16.mxu0 %v1321_v4  ;;  %669 = vmatprep.subr.bf16.mxu1 %v1363_v15  ;;  %v45_v20 = vld [vmem:[%s1756_s0 + $0x18] sm:$0xff]  ;;  %v52_v21 = vld [vmem:[%s1756_s0 + $0x50] sm:$0xff]  ;;  %v1371_v22 = vld [vmem:[#allocation2 + $0x20] ss:$8 sps:$4 sm:$0xff]   ;;  %vm663_vm0 = vcmask 130048   ;;  %vm974_vm1 = vcmask 523264  }
  0x1b   :  { %v59_v23 = vpack.c.bf16 %v52_v21, %v45_v20  ;;  %v1338_v24 = vld [vmem:[#allocation2 + $0x170] ss:$8 sps:$4 sm:$0xff]   ;;  %v1339_v25 = vld [vmem:[#allocation2 + $0x184] ss:$8 sps:$4 sm:$0xff]   ;;  %v1375_v26 = vld [vmem:[#allocation2 + $0x34] ss:$8 sps:$4 sm:$0xff]  }
  0x1c   :  { %v1377_v27 = vld [vmem:[#allocation2 + $0x30] ss:$8 sps:$4 sm:$0xff]   ;;  %v1341_v28 = vld [vmem:[#allocation2 + $0x180] ss:$8 sps:$4 sm:$0xff]   ;;  %v1381_v29 = vld [vmem:[#allocation2 + $0x44] ss:$8 sps:$4 sm:$0xff]  }
  0x1d   :  { %715 = vmatpush1.bf16.msra.mxu0 %v1323_v5  ;;  %670 = vmatpush1.bf16.msra.mxu1 %v1365_v16  ;;  %v1342_v30 = vld [vmem:[#allocation2 + $0x194] ss:$8 sps:$4 sm:$0xff]   ;;  %v1383_v31 = vld [vmem:[#allocation2 + $0x40] ss:$8 sps:$4 sm:$0xff]   ;;  %v1344_v32 = vld [vmem:[#allocation2 + $0x190] ss:$8 sps:$4 sm:$0xff]  }
  0x1e   :  { %716 = vmatprep.subr.bf16.mxu0 %v1324_v6  ;;  %671 = vmatprep.subr.bf16.mxu1 %v1369_v19  ;;  %v1387_v33 = vld [vmem:[#allocation2 + $0x54] ss:$8 sps:$4 sm:$0xff]   ;;  %v1345_v34 = vld [vmem:[#allocation2 + $0x1a4] ss:$8 sps:$4 sm:$0xff]   ;;  %v1389_v35 = vld [vmem:[#allocation2 + $0x50] ss:$8 sps:$4 sm:$0xff]  }
  0x1f   :  { %742 = vmatprep.mubr.bf16.mxu0 %v59_v23  ;;  %v1347_v36 = vld [vmem:[#allocation2 + $0x1a0] ss:$8 sps:$4 sm:$0xff]   ;;  %v1393_v37 = vld [vmem:[#allocation2 + $0x64] ss:$8 sps:$4 sm:$0xff]   ;;  %v1348_v38 = vld [vmem:[#allocation2 + $0x1b4] ss:$8 sps:$4 sm:$0xff]  }
  0x20   :  { %v1395_v39 = vld [vmem:[#allocation2 + $0x60] ss:$8 sps:$4 sm:$0xff]   ;;  %v1350_v40 = vld [vmem:[#allocation2 + $0x1b0] ss:$8 sps:$4 sm:$0xff]   ;;  %v1399_v41 = vld [vmem:[#allocation2 + $0x74] ss:$8 sps:$4 sm:$0xff]  }
  0x21   :  { %717 = vmatpush1.bf16.msra.mxu0 %v1326_v7  ;;  %672 = vmatpush1.bf16.msra.mxu1 %v1371_v22  ;;  %v1351_v42 = vld [vmem:[#allocation2 + $0x1c4] ss:$8 sps:$4 sm:$0xff]   ;;  %v1401_v43 = vld [vmem:[#allocation2 + $0x70] ss:$8 sps:$4 sm:$0xff]   ;;  %v1353_v44 = vld [vmem:[#allocation2 + $0x1c0] ss:$8 sps:$4 sm:$0xff]  }
  0x22   :  { %718 = vmatprep.subr.bf16.mxu0 %v1327_v8  ;;  %673 = vmatprep.subr.bf16.mxu1 %v1375_v26  ;;  %v1405_v45 = vld [vmem:[#allocation2 + $0x84] ss:$8 sps:$4 sm:$0xff]   ;;  %v1354_v46 = vld [vmem:[#allocation2 + $0x1d4] ss:$8 sps:$4 sm:$0xff]   ;;  %v1407_v47 = vld [vmem:[#allocation2 + $0x80] ss:$8 sps:$4 sm:$0xff]  }
  0x23   :  { %v1356_v48 = vld [vmem:[#allocation2 + $0x1d0] ss:$8 sps:$4 sm:$0xff]   ;;  %v1411_v49 = vld [vmem:[#allocation2 + $0x94] ss:$8 sps:$4 sm:$0xff]   ;;  %v1360_v50 = vld [vmem:[#allocation2 + $0x1e4] ss:$8 sps:$4 sm:$0xff]  }
  0x24   :  { %v1413_v51 = vld [vmem:[#allocation2 + $0x90] ss:$8 sps:$4 sm:$0xff]   ;;  %v1362_v52 = vld [vmem:[#allocation2 + $0x1e0] ss:$8 sps:$4 sm:$0xff]   ;;  %v1417_v53 = vld [vmem:[#allocation2 + $0xa4] ss:$8 sps:$4 sm:$0xff]  }
  0x25   :  { %719 = vmatpush1.bf16.msra.mxu0 %v1329_v9  ;;  %674 = vmatpush1.bf16.msra.mxu1 %v1377_v27  ;;  %v1366_v54 = vld [vmem:[#allocation2 + $0x1f4] ss:$8 sps:$4 sm:$0xff]   ;;  %v1368_v55 = vld [vmem:[#allocation2 + $0x1f0] ss:$8 sps:$4 sm:$0xff]   ;;  %v1419_v57 = vld [vmem:[#allocation2 + $0xa0] ss:$8 sps:$4 sm:$0xff]  }
  0x26   :  { %720 = vmatprep.subr.bf16.mxu0 %v1330_v10  ;;  %675 = vmatprep.subr.bf16.mxu1 %v1381_v29  ;;  %v44_v56 = vld [vmem:[%s1756_s0 + $0x10] sm:$0xff]  ;;  %v51_v58 = vld [vmem:[%s1756_s0 + $0x48] sm:$0xff]  ;;  %v50_v2 = vld [vmem:[%s1756_s0 + $0x40] sm:$0xff]  ;;  %s1514_s14 = smov [#allocation5]   ;;  %vm1056_vm2 = vcmask 80896  }
  0x27   :  { %v1423_v59 = vld [vmem:[#allocation2 + $0xb4] ss:$8 sps:$4 sm:$0xff]   ;;  %v1374_v60 = vld [vmem:[#allocation2 + $0x204] ss:$8 sps:$4 sm:$0xff]   ;;  %v58_v61 = vpack.c.bf16 %v51_v58, %v44_v56  ;;  %v1425_v62 = vld [vmem:[#allocation2 + $0xb0] ss:$8 sps:$4 sm:$0xff]  }
  0x28   :  { %v43_v63 = vld [vmem:[%s1756_s0 + $0x8] sm:$0xff]  ;;  %v1380_v3 = vld [vmem:[#allocation2 + $0x214] ss:$8 sps:$4 sm:$0xff]   ;;  %v1378_v6 = vld [vmem:[#allocation2 + $0x210] ss:$8 sps:$4 sm:$0xff]   ;;  %s1064_s1 = sshll.u32 %s1514_s14, 4  ;;  %s1065_s1 = int_to_ptr.vmem [resolvable:$true] %s1064_s1 }
  0x29   :  { %721 = vmatpush1.bf16.msra.mxu0 %v1332_v11  ;;  %676 = vmatpush1.bf16.msra.mxu1 %v1383_v31  ;;  %v1372_v0 = vld [vmem:[#allocation2 + $0x200] ss:$8 sps:$4 sm:$0xff]   ;;  %v1429_v1 = vld [vmem:[#allocation2 + $0xc4] ss:$8 sps:$4 sm:$0xff]   ;;  %v57_v4 = vpack.c.bf16 %v50_v2, %v43_v63  ;;  %v1435_v7 = vld [vmem:[#allocation2 + $0xd4] ss:$8 sps:$4 sm:$0xff]   ;;  %p1489_p9 = scmp.lt.s32.totalorder %s1065_s1, %s1065_s1 }
  0x2a   :  { %722 = vmatprep.subr.bf16.mxu0 %v1333_v14  ;;  %677 = vmatprep.subr.bf16.mxu1 %v1387_v33  ;;  %v1431_v5 = vld [vmem:[#allocation2 + $0xc0] ss:$8 sps:$4 sm:$0xff]   ;;  %v1386_v8 = vld [vmem:[#allocation2 + $0x224] ss:$8 sps:$4 sm:$0xff]   ;;  %v1437_v12 = vld [vmem:[#allocation2 + $0xd0] ss:$8 sps:$4 sm:$0xff]  }
  0x2b   :  { %699 = vmatprep.mubr.bf16.mxu1 %v57_v4  ;;  %v47_v9 = vld [vmem:[%s1756_s0 + $0x28] sm:$0xff]  ;;  %v54_v10 = vld [vmem:[%s1756_s0 + $0x60] sm:$0xff]  ;;  %v1392_v15 = vld [vmem:[#allocation2 + $0x234] ss:$8 sps:$4 sm:$0xff]   ;;  %v1513_v33 = vmov 0  }
  0x2c   :  { %v61_v11 = vpack.c.bf16 %v54_v10, %v47_v9  ;;  %v1384_v13 = vld [vmem:[#allocation2 + $0x220] ss:$8 sps:$4 sm:$0xff]   ;;  %v1441_v14 = vld [vmem:[#allocation2 + $0xe4] ss:$8 sps:$4 sm:$0xff]   ;;  %v1449_v20 = vld [vmem:[#allocation2 + $0xf0] ss:$8 sps:$4 sm:$0xff]  }
  0x2d   :  { %723 = vmatpush1.bf16.msra.mxu0 %v1335_v17  ;;  %678 = vmatpush1.bf16.msra.mxu1 %v1389_v35  ;;  %v1443_v16 = vld [vmem:[#allocation2 + $0xe0] ss:$8 sps:$4 sm:$0xff]   ;;  %v1390_v17 = vld [vmem:[#allocation2 + $0x230] ss:$8 sps:$4 sm:$0xff]   ;;  %v1398_v19 = vld [vmem:[#allocation2 + $0x244] ss:$8 sps:$4 sm:$0xff]  }
  0x2e   :  { %724 = vmatprep.subr.bf16.mxu0 %v1336_v18  ;;  %679 = vmatprep.subr.bf16.mxu1 %v1393_v37  ;;  %v1447_v18 = vld [vmem:[#allocation2 + $0xf4] ss:$8 sps:$4 sm:$0xff]   ;;  %v42_v21 = vld [vmem:[%s1756_s0] sm:$0xff]  ;;  %v860_v27 = vld [vmem:[%s1759_s3 + $0x88] sm:$0xff] }
  0x2f   :  { %v49_v22 = vld [vmem:[%s1756_s0 + $0x38] sm:$0xff]  ;;  %v1396_v23 = vld [vmem:[#allocation2 + $0x240] ss:$8 sps:$4 sm:$0xff]   ;;  %v1455_v9 = vld [vmem:[#allocation2 + $0x2e4] ss:$8 sps:$4 sm:$0xff]  }
  0x30   :  { %v859_v26 = vld [vmem:[%s1759_s3 + $0x80] sm:$0xff]  ;;  %v55_v35 = vld [vmem:[%s1756_s0 + $0x68] sm:$0xff]  ;;  %v1428_v56 = vld [vmem:[#allocation2 + $0x294] ss:$8 sps:$4 sm:$0xff]  }
  0x31   :  { %725 = vmatpush1.bf16.msra.mxu0 %v1338_v24  ;;  %680 = vmatpush1.bf16.msra.mxu1 %v1395_v39  ;;  %v1458_v24 = vld [vmem:[#allocation2 + $0x304] ss:$8 sps:$4 sm:$0xff]   ;;  %v1456_v29 = vld [vmem:[#allocation2 + $0x300] ss:$8 sps:$4 sm:$0xff]   ;;  %v1246_v31 = vpack.c.bf16 %v860_v27, %v859_v26  ;;  %v1416_v39 = vld [vmem:[#allocation2 + $0x274] ss:$8 sps:$4 sm:$0xff]  }
  0x32   :  { %726 = vmatprep.subr.bf16.mxu0 %v1339_v25  ;;  %681 = vmatprep.subr.bf16.mxu1 %v1399_v41  ;;  %v1404_v25 = vld [vmem:[#allocation2 + $0x254] ss:$8 sps:$4 sm:$0xff]   ;;  %v843_v37 = vld [vmem:[%s1759_s3] sm:$0xff]  ;;  %v1438_v4 = vld [vmem:[#allocation2 + $0x2b0] ss:$8 sps:$4 sm:$0xff]  }
  0x33   :  { %v862_v41 = vld [vmem:[%s1759_s3 + $0x98] sm:$0xff]  ;;  %v1432_v2 = vld [vmem:[#allocation2 + $0x2a0] ss:$8 sps:$4 sm:$0xff]  }
  0x34   :  { %v866_v58 = vld [vmem:[%s1759_s3 + $0xb8] sm:$0xff]  ;;  %v1453_v10 = vld [vmem:[#allocation2 + $0x2e0] ss:$8 sps:$4 sm:$0xff]  }
  0x35   :  { %727 = vmatpush1.bf16.msra.mxu0 %v1341_v28  ;;  %682 = vmatpush1.bf16.msra.mxu1 %v1401_v43  ;;  %v56_v28 = vpack.c.bf16 %v49_v22, %v42_v21  ;;  %v850_v63 = vld [vmem:[%s1759_s3 + $0x38] sm:$0xff]  ;;  %v869_v21 = vld [vmem:[%s1759_s3 + $0xd0] sm:$0xff] }
  0x36   :  { %728 = vmatprep.subr.bf16.mxu0 %v1342_v30  ;;  %683 = vmatprep.subr.bf16.mxu1 %v1405_v45  ;;  %v1402_v30 = vld [vmem:[#allocation2 + $0x250] ss:$8 sps:$4 sm:$0xff]  }
  0x39   :  { %729 = vmatpush1.bf16.msra.mxu0 %v1344_v32  ;;  %684 = vmatpush1.bf16.msra.mxu1 %v1407_v47  ;;  %v1410_v32 = vld [vmem:[#allocation2 + $0x264] ss:$8 sps:$4 sm:$0xff]   ;;  %v846_v47 = vld [vmem:[%s1759_s3 + $0x18] sm:$0xff] }
  0x3a   :  { %730 = vmatprep.subr.bf16.mxu0 %v1345_v34  ;;  %685 = vmatprep.subr.bf16.mxu1 %v1411_v49  ;;  %v48_v34 = vld [vmem:[%s1756_s0 + $0x30] sm:$0xff]  ;;  %v863_v49 = vld [vmem:[%s1759_s3 + $0xa0] sm:$0xff] }
  0x3d   :  { %731 = vmatpush1.bf16.msra.mxu0 %v1347_v36  ;;  %686 = vmatpush1.bf16.msra.mxu1 %v1413_v51  ;;  %v1408_v36 = vld [vmem:[#allocation2 + $0x260] ss:$8 sps:$4 sm:$0xff]  }
  0x3e   :  { %732 = vmatprep.subr.bf16.mxu0 %v1348_v38  ;;  %687 = vmatprep.subr.bf16.mxu1 %v1417_v53  ;;  %v844_v38 = vld [vmem:[%s1759_s3 + $0x8] sm:$0xff] }
  0x3f   :  { %v1248_v43 = vpack.c.bf16 %v844_v38, %v843_v37  ;;  %v857_v37 = vld [vmem:[%s1759_s3 + $0x70] sm:$0xff]  ;;  %v858_v38 = vld [vmem:[%s1759_s3 + $0x78] sm:$0xff] }
  0x41   :  { %733 = vmatpush1.bf16.msra.mxu0 %v1350_v40  ;;  %688 = vmatpush1.bf16.msra.mxu1 %v1419_v57  ;;  %v861_v40 = vld [vmem:[%s1759_s3 + $0x90] sm:$0xff] }
  0x42   :  { %734 = vmatprep.subr.bf16.mxu0 %v1351_v42  ;;  %689 = vmatprep.subr.bf16.mxu1 %v1423_v59  ;;  %v62_v42 = vpack.c.bf16 %v55_v35, %v48_v34  ;;  %v1250_v45 = vpack.c.bf16 %v862_v41, %v861_v40  ;;  %v865_v57 = vld [vmem:[%s1759_s3 + $0xb0] sm:$0xff]  ;;  %v874_v35 = vld [vmem:[%s1759_s3 + $0xf8] sm:$0xff]  ;;  %v959_v40 = vld [vmem:[%s1761_s5] sm:$0xff] }
  0x43   :  { %v873_v34 = vld [vmem:[%s1759_s3 + $0xf0] sm:$0xff]  ;;  %v960_v41 = vld [vmem:[%s1761_s5 + $0x8] sm:$0xff] }
  0x45   :  { %735 = vmatpush1.bf16.msra.mxu0 %v1353_v44  ;;  %690 = vmatpush1.bf16.msra.mxu1 %v1425_v62  ;;  %v1414_v44 = vld [vmem:[#allocation2 + $0x270] ss:$8 sps:$4 sm:$0xff]  }
  0x46   :  { %736 = vmatprep.subr.bf16.mxu0 %v1354_v46  ;;  %691 = vmatprep.subr.bf16.mxu1 %v1429_v1  ;;  %v845_v46 = vld [vmem:[%s1759_s3 + $0x10] sm:$0xff] }
  0x47   :  { %v1252_v51 = vpack.c.bf16 %v846_v47, %v845_v46  ;;  %v849_v62 = vld [vmem:[%s1759_s3 + $0x30] sm:$0xff] }
  0x48   :  { %v1260_v1 = vpack.c.bf16 %v850_v63, %v849_v62 }
  0x49   :  { %737 = vmatpush1.bf16.msra.mxu0 %v1356_v48  ;;  %692 = vmatpush1.bf16.msra.mxu1 %v1431_v5  ;;  %v1422_v48 = vld [vmem:[#allocation2 + $0x284] ss:$8 sps:$4 sm:$0xff]  }
  0x4a   :  { %738 = vmatprep.subr.bf16.mxu0 %v1360_v50  ;;  %693 = vmatprep.subr.bf16.mxu1 %v1435_v7  ;;  %v864_v50 = vld [vmem:[%s1759_s3 + $0xa8] sm:$0xff]  ;;  %v1452_v7 = vld [vmem:[#allocation2 + $0x2d4] ss:$8 sps:$4 sm:$0xff]  }
  0x4b   :  { %v1254_v53 = vpack.c.bf16 %v864_v50, %v863_v49  ;;  %v1446_v5 = vld [vmem:[#allocation2 + $0x2c4] ss:$8 sps:$4 sm:$0xff]  }
  0x4d   :  { %739 = vmatpush1.bf16.msra.mxu0 %v1362_v52  ;;  %694 = vmatpush1.bf16.msra.mxu1 %v1437_v12  ;;  %v1420_v52 = vld [vmem:[#allocation2 + $0x280] ss:$8 sps:$4 sm:$0xff]   ;;  %v1459_v12 = vld [vmem:[#allocation2 + $0x2f0] ss:$8 sps:$4 sm:$0xff]  }
  0x4e   :  { %740 = vmatprep.subr.bf16.mxu0 %v1366_v54  ;;  %695 = vmatprep.subr.bf16.mxu1 %v1441_v14  ;;  %v847_v54 = vld [vmem:[%s1759_s3 + $0x20] sm:$0xff]  ;;  %v53_v14 = vld [vmem:[%s1756_s0 + $0x58] sm:$0xff] }
  0x51   :  { %741 = vmatpush1.bf16.msra.mxu0 %v1368_v55  ;;  %696 = vmatpush1.bf16.msra.mxu1 %v1443_v16  ;;  %v848_v55 = vld [vmem:[%s1759_s3 + $0x28] sm:$0xff]  ;;  %v867_v16 = vld [vmem:[%s1759_s3 + $0xc0] sm:$0xff] }
  0x52   :  { %753 = vmatprep.subr.bf16.mxu0 %v1374_v60  ;;  %697 = vmatprep.subr.bf16.mxu1 %v1447_v18  ;;  %v1256_v59 = vpack.c.bf16 %v848_v55, %v847_v54  ;;  %v1426_v60 = vld [vmem:[#allocation2 + $0x290] ss:$8 sps:$4 sm:$0xff]   ;;  %v161_v54 = vld [vmem:[%s1758_s2] sm:$0x3] }
  0x54   :  { %743 = vmatmul.mubr.bf16.vlgmr.msra.gmra.mrb[0].mxu0 %v58_v61  ;;  %v1258_v61 = vpack.c.bf16 %v866_v58, %v865_v57 }
  0x55   :  { %754 = vmatpush1.bf16.msra.mxu0 %v1372_v0  ;;  %785 = vmatprep.mubr.bf16.mxu0 %v61_v11  ;;  %v1434_v0 = vld [vmem:[#allocation2 + $0x2a4] ss:$8 sps:$4 sm:$0xff]   ;;  %v1461_v11 = vld [vmem:[#allocation2 + $0x2f4] ss:$8 sps:$4 sm:$0xff]  }
  0x56   :  { %755 = vmatprep.subr.bf16.mxu0 %v1380_v3  ;;  %698 = vmatpush1.bf16.msra.mxu1 %v1449_v20  ;;  %v1440_v3 = vld [vmem:[#allocation2 + $0x2b4] ss:$8 sps:$4 sm:$0xff]   ;;  %v852_v20 = vld [vmem:[%s1759_s3 + $0x48] sm:$0xff] }
  0x57   :  { %796 = vmatprep.subr.bf16.mxu1 %v1458_v24  ;;  %v853_v24 = vld [vmem:[%s1759_s3 + $0x50] sm:$0xff] }
  0x59   :  { %756 = vmatpush1.bf16.msra.mxu0 %v1378_v6  ;;  %700 = vmatmul.mubr.bf16.vlgmr.msra.gmra.mrb[0].mxu1 %v56_v28  ;;  %v1444_v6 = vld [vmem:[#allocation2 + $0x2c0] ss:$8 sps:$4 sm:$0xff]  }
  0x5a   :  { %757 = vmatprep.subr.bf16.mxu0 %v1386_v8  ;;  %797 = vmatpush1.bf16.msra.mxu1 %v1456_v29  ;;  %v1450_v8 = vld [vmem:[#allocation2 + $0x2d0] ss:$8 sps:$4 sm:$0xff]   ;;  %v871_v28 = vld [vmem:[%s1759_s3 + $0xe0] sm:$0xff]  ;;  %v872_v29 = vld [vmem:[%s1759_s3 + $0xe8] sm:$0xff] }
  0x5b   :  { %828 = vmatprep.mubr.bf16.mxu1 %v1513_v33  ;;  %1247 = vmatprep.subr.bf16.mxu1 %v1246_v31  ;;  %v855_v31 = vld [vmem:[%s1759_s3 + $0x60] sm:$0xff] }
  0x5d   :  { %758 = vmatpush1.bf16.msra.mxu0 %v1384_v13  ;;  %v46_v13 = vld [vmem:[%s1756_s0 + $0x20] sm:$0xff] }
  0x5e   :  { %759 = vmatprep.subr.bf16.mxu0 %v1392_v15  ;;  %v60_v15 = vpack.c.bf16 %v53_v14, %v46_v13  ;;  %v961_v14 = vld [vmem:[%s1761_s5 + $0x10] sm:$0xff] }
  0x61   :  { %760 = vmatpush1.bf16.msra.mxu0 %v1390_v17  ;;  %1174 = vmatmul.mubr.msk.bf16.vlgmr.msra.gmra.mrb[4].mxu1 %vm663_vm0, %v62_v42  ;;  %v868_v17 = vld [vmem:[%s1759_s3 + $0xc8] sm:$0xff]  ;;  %v1278_v42 = vpack.c.bf16 %v960_v41, %v959_v40 }
  0x62   :  { %761 = vmatprep.subr.bf16.mxu0 %v1398_v19  ;;  %1249 = vmatpush3.bf16.msra.mxu1 %v1248_v43  ;;  %v1262_v18 = vpack.c.bf16 %v868_v17, %v867_v16  ;;  %v851_v19 = vld [vmem:[%s1759_s3 + $0x40] sm:$0xff] }
  0x63   :  { %1251 = vmatprep.subr.bf16.mxu1 %v1250_v45  ;;  %v1264_v22 = vpack.c.bf16 %v852_v20, %v851_v19  ;;  %v963_v17 = vld [vmem:[%s1761_s5 + $0x20] sm:$0xff]  ;;  %v965_v20 = vld [vmem:[%s1761_s5 + $0x30] sm:$0xff] }
  0x65   :  { %762 = vmatpush1.bf16.msra.mxu0 %v1396_v23  ;;  %v870_v23 = vld [vmem:[%s1759_s3 + $0xd8] sm:$0xff] }
  0x66   :  { %763 = vmatprep.subr.bf16.mxu0 %v1404_v25  ;;  %1253 = vmatpush3.bf16.msra.mxu1 %v1252_v51  ;;  %v854_v25 = vld [vmem:[%s1759_s3 + $0x58] sm:$0xff]  ;;  %v1266_v26 = vpack.c.bf16 %v870_v23, %v869_v21  ;;  %v163_v51 = vlaneseq }
  0x67   :  { %1255 = vmatprep.subr.bf16.mxu1 %v1254_v53  ;;  %v1268_v27 = vpack.c.bf16 %v854_v25, %v853_v24  ;;  %v966_v21 = vld [vmem:[%s1761_s5 + $0x38] sm:$0xff]  ;;  %v1175_v24 = vld [vmem:[%s1760_s4] ss:$0 sm:$0xff]  ;;  %s1484_s4 = scalar_lea.vmem %s1065_s1, 256 }
  0x68   :  { %p1485_p8 = scmp.ne.s32.totalorder %s1065_s1, %s1484_s4  ;;  %p1490_p10 = scmp.lt.s32.totalorder %s1484_s4, %s1484_s4 }
  0x69   :  { %764 = vmatpush1.bf16.msra.mxu0 %v1402_v30  ;;  %v1270_v30 = vpack.c.bf16 %v872_v29, %v871_v28 }
  0x6a   :  { %765 = vmatprep.subr.bf16.mxu0 %v1410_v32  ;;  %1257 = vmatpush3.bf16.msra.mxu1 %v1256_v59  ;;  %v856_v32 = vld [vmem:[%s1759_s3 + $0x68] sm:$0xff]  ;;  %p1491_p11 = por %p1490_p10, %p1489_p9 }
  0x6b   :  { %1259 = vmatprep.subr.bf16.mxu1 %v1258_v61  ;;  %v1272_v33 = vpack.c.bf16 %v856_v32, %v855_v31 }
  0x6c   :  { %p1492_p12 = pnand %p1491_p11, %p1485_p8 }
  0x6d   :  { %766 = vmatpush1.bf16.msra.mxu0 %v1408_v36  ;;  %v1274_v36 = vpack.c.bf16 %v874_v35, %v873_v34  ;;  %v1176_v34 = vld [vmem:[%s1762_s6] ss:$0 sm:$0xff] }
  0x6e   :  { %767 = vmatprep.subr.bf16.mxu0 %v1416_v39  ;;  %1261 = vmatpush3.bf16.msra.mxu1 %v1260_v1  ;;  %v1276_v39 = vpack.c.bf16 %v858_v38, %v857_v37 }
  0x6f   :  { %1263 = vmatprep.subr.bf16.mxu1 %v1262_v18  ;;  %v964_v18 = vld [vmem:[%s1761_s5 + $0x28] sm:$0xff] }
  0x70   :  { %v1286_v19 = vpack.c.bf16 %v964_v18, %v963_v17 }
  0x71   :  { %768 = vmatpush1.bf16.msra.mxu0 %v1414_v44 }
  0x72   :  { %769 = vmatprep.subr.bf16.mxu0 %v1422_v48  ;;  %1265 = vmatpush3.bf16.msra.mxu1 %v1264_v22  ;;  %v1290_v22 = vpack.c.bf16 %v966_v21, %v965_v20 }
  0x73   :  { %1267 = vmatprep.subr.bf16.mxu1 %v1266_v26 }
  0x75   :  { %770 = vmatpush1.bf16.msra.mxu0 %v1420_v52  ;;  %v164_v52 = vshrl.u32 %v163_v51, 7 }
  0x76   :  { %771 = vmatprep.subr.bf16.mxu0 %v1428_v56  ;;  %1269 = vmatpush3.bf16.msra.mxu1 %v1268_v27 }
  0x77   :  { %1271 = vmatprep.subr.bf16.mxu1 %v1270_v30  ;;  %v165_v53 = vsub.s32 0, %v164_v52  ;;  %v169_v55 = vsub.s32 1, %v164_v52 }
  0x79   :  { %772 = vmatpush1.bf16.msra.mxu0 %v1426_v60  ;;  %v166_v56 = vrot.slane %v161_v54, %v165_v53  ;;  %v170_v57 = vrot.slane %v161_v54, %v169_v55 }
  0x7a   :  { %773 = vmatprep.subr.bf16.mxu0 %v1434_v0  ;;  %1273 = vmatpush3.bf16.msra.mxu1 %v1272_v33 }
  0x7b   :  { %1275 = vmatprep.subr.bf16.mxu1 %v1274_v36 }
  0x7d   :  { %774 = vmatpush1.bf16.msra.mxu0 %v1432_v2 }
  0x7e   :  { %775 = vmatprep.subr.bf16.mxu0 %v1440_v3  ;;  %1277 = vmatpush3.bf16.msra.mxu1 %v1276_v39 }
  0x7f   :  { %1279 = vmatprep.subr.bf16.mxu1 %v1278_v42 }
  0x81   :  { %776 = vmatpush1.bf16.msra.mxu0 %v1438_v4 }
  0x82   :  { %777 = vmatprep.subr.bf16.mxu0 %v1446_v5 }
  0x85   :  { %778 = vmatpush1.bf16.msra.mxu0 %v1444_v6 }
  0x86   :  { %779 = vmatprep.subr.bf16.mxu0 %v1452_v7 }
  0x89   :  { %780 = vmatpush1.bf16.msra.mxu0 %v1450_v8 }
  0x8a   :  { %781 = vmatprep.subr.bf16.mxu0 %v1455_v9 }
  0x8d   :  { %782 = vmatpush1.bf16.msra.mxu0 %v1453_v10 }
  0x8e   :  { %783 = vmatprep.subr.bf16.mxu0 %v1461_v11 }
  0x91   :  { %784 = vmatpush1.bf16.msra.mxu0 %v1459_v12 }
  0x94   :  { %786 = vmatmul.mubr.bf16.vlgmr.msra.gmra.mrb[0].mxu0 %v60_v15  ;;  %v962_v15 = vld [vmem:[%s1761_s5 + $0x18] sm:$0xff] }
  0x95   :  { %v1282_v16 = vpack.c.bf16 %v962_v15, %v961_v14 }
 0x12c   :  { %v701_v43 = vpop.f32.mrb[0].mxu1 }
 0x12d   :  { %v703_v44 = vpop.f32.mrb[1].mxu1  ;;  %v702_v58 = vadd.f32 %v701_v43, %v166_v56 }
 0x12e   :  { %v705_v45 = vpop.f32.mrb[2].mxu1  ;;  %v704_v59 = vadd.f32 %v703_v44, %v170_v57 }
 0x12f   :  { %v707_v46 = vpop.f32.mrb[3].mxu1  ;;  %v706_v61 = vadd.f32 %v705_v45, %v166_v56 }
 0x130   :  { %v708_v0 = vadd.f32 %v707_v46, %v170_v57 }
 0x134   :  { %v830_v47 = vpop.f32.mrb[4].mxu1 }
 0x135   :  { %v832_v48 = vpop.f32.mrb[5].mxu1 }
 0x136   :  { %v834_v49 = vpop.f32.mrb[6].mxu1 }
 0x137   :  { %v836_v50 = vpop.f32.mrb[7].mxu1 }
 0x167   :  { %v787_v60 = vpop.f32.mrb[0].mxu0 }
 0x168   :  { %v1295_v62 = vadd.f32 %v787_v60, %v702_v58  ;;  %v789_v63 = vpop.f32.mrb[1].mxu0 }
 0x169   :  { %v1298_v1 = vadd.f32 %v789_v63, %v704_v59  ;;  %v791_v2 = vpop.f32.mrb[2].mxu0 }
 0x16a   :  { %v1296_v3 = vadd.f32 %v1295_v62, %v830_v47  ;;  %v1301_v4 = vadd.f32 %v791_v2, %v706_v61  ;;  %v793_v5 = vpop.f32.mrb[3].mxu0 }
 0x16b   :  { %v1299_v6 = vadd.f32 %v1298_v1, %v832_v48  ;;  %v1304_v7 = vadd.f32 %v793_v5, %v708_v0 }
 0x16c   :  { %v1302_v8 = vadd.f32 %v1301_v4, %v834_v49  ;;  %v839_v11 = vmax.f32 %v1296_v3, 0.0 }
 0x16d   :  { %v840_v9 = vmax.f32 %v1299_v6, 0.0  ;;  %v1305_v10 = vadd.f32 %v1304_v7, %v836_v50 }
 0x16e   :  { %v841_v13 = vmax.f32 %v1302_v8, 0.0 }
 0x16f   :  { %v842_v12 = vmax.f32 %v1305_v10, 0.0  ;;  %946 = vmatprep.mubr.f32.mxu1 %v840_v9 }
 0x170   :  { %947 = vmatmul.mubr.f32.vlgmr.msra.gmra.mrb[8].mxu1 %v839_v11 }
 0x171   :  { %951 = vmatprep.mubr.f32.mxu1 %v842_v12  ;;  %1281 = vmatpush3.bf16.msra.mxu1 %v1278_v42 }
 0x172   :  { %1283 = vmatprep.subr.bf16.mxu1 %v1282_v16 }
 0x174   :  { %952 = vmatmul.mubr.f32.gmra.mrb[10].mxu1 %v841_v13 }
 0x175   :  { %1285 = vmatpush3.bf16.msra.mxu1 %v1282_v16 }
 0x176   :  { %1287 = vmatprep.subr.bf16.mxu1 %v1286_v19 }
 0x179   :  { %1289 = vmatpush3.bf16.msra.mxu1 %v1286_v19 }
 0x17a   :  { %1291 = vmatprep.subr.bf16.mxu1 %v1290_v22 }
 0x17d   :  { %1293 = vmatpush3.bf16.msra.mxu1 %v1290_v22 }
 0x243   :  { %v1211_v23 = vpop.f32.mrb[8].mxu1 }
 0x244   :  { %v1212_v25 = vpop.f32.mrb[9].mxu1 }
 0x245   :  { %v1213_v26 = vadd.f32 %v1212_v25, %v1211_v23 }
 0x247   :  { %v949_v27 = vadd.f32 %v1213_v26, %v1175_v24  ;;  %v1214_v28 = vpop.f32.mrb[10].mxu1 }
 0x248   :  { %v1215_v29 = vpop.f32.mrb[11].mxu1 }
 0x249   :  { %v957_v30 = vmax.f32 %v949_v27, 0.0  ;;  %v1216_v31 = vadd.f32 %v1215_v29, %v1214_v28 }
 0x24b   :  { %v954_v32 = vadd.f32 %v1216_v31, %v1175_v24  ;;  %1243 = vmatprep.mubr.msk.f32.mxu1 %vm974_vm1, %v957_v30 }
 0x24d   :  { %v958_v33 = vmax.f32 %v954_v32, 0.0 }
 0x24f   :  { %1244 = vmatmul.mubr.msk.f32.vlgmr.msra.gmra.mrb[12].mxu1 %vm974_vm1, %v958_v33 }
 0x322   :  { %v1245_v35 = vpop.f32.mrb[12].mxu1 }
 0x323   :  { %v1053_v36 = vadd.f32 %v1245_v35, %v1176_v34  ;;  %v1047_v37 = vpop.f32.mrb[13].mxu1 }
 0x324   :  { %v1048_v38 = vadd.f32 %v1176_v34, %v1047_v37 }
 0x325   :  { %1058 = vst.msk [vmem:[#allocation5 + $0x8] sm:$0xff] %vm1056_vm2, %v1053_v36 }
 0x326   :  { %1057 = vst.msk [vmem:[#allocation5] sm:$0xff] %vm1056_vm2, %v1048_v38 }
 0x327   :  { %1495 = shalt.err (!%p1492_p12)
}
 0x328   :  { %s1496_s6 = scalar_lea.hbm %s1763_s7, 256 }
 0x329   :  { %p1497_p13 = scmp.ne.s32.totalorder %s1763_s7, %s1496_s6  ;;  %p1500_p0 = scmp.lt.u32.totalorder %s1496_s6, %s1763_s7 }
 0x32b   :  { %p1502_p1 = pnand %p1500_p0, %p1497_p13 }
 0x32d   :  { %1505 = shalt.err (!%p1502_p1)
}
 0x32e   :  { %1070 = dma.vmem_to_hbm [thread:$0]  %s1065_s1, 256, %s1763_s7, [#allocation4], %s1511_s11, %s1511_s11, %s1512_s12  }
 0x32f   :  { %1508 = dma.done.wait [#allocation4], 256  }
 0x330   :  { %1509 = vsyncadd [#allocation4], 4294967040 }
 0x331   :  { %1074 = vsyncpa [#allocation3], 1 }
 0x332   :  { %1075 = vsyncpa [#allocation4], 1 }

</bundles_post_ra>
